<compile_context>
chip_gen: v7x
topology: tpu7x:2x2x1
jax: 0.10.0
libtpu: 0.0.40
codegen_flags: <defaults>
</compile_context>

<pallas_src>
import math

import jax
import jax.numpy as jnp
from jax.experimental import pallas as pl
from jax.experimental.pallas import tpu as pltpu


def _cdiv(a, b):
    return -(-a // b)


def _round_up(n, m):
    return _cdiv(n, m) * m


def _gelu_tanh(x):
    # PyTorch "gelu_pytorch_tanh": 0.5*x*(1+tanh(sqrt(2/pi)*(x+0.044715*x^3)))
    c = math.sqrt(2.0 / math.pi)
    return 0.5 * x * (1.0 + jnp.tanh(c * (x + 0.044715 * x * x * x)))


def siglip_mlp_kernel(x_ref, w1_ref, b1_ref, w2_ref, b2_ref, o_ref, acc_ref):
    # x_ref:  (tm, H)    VMEM (current M tile)
    # w1_ref: (H,  ti)   VMEM (current contiguous I-slab of fc1 weight)
    # b1_ref: (1,  ti)   VMEM (f32)
    # w2_ref: (ti, H)    VMEM (current I-slab of fc2 weight)
    # b2_ref: (1,  H)    VMEM (f32)
    # o_ref:  (tm, H)    VMEM
    # acc_ref:(tm, H)    VMEM f32 accumulator (resident across the I axis)
    k = pl.program_id(1)

    @pl.when(k == 0)
    def _():
        # Fold the fc2 bias into the accumulator initialization.
        acc_ref[...] = jnp.broadcast_to(
            b2_ref[...].astype(jnp.float32), acc_ref.shape)

    # fc1 slab: (tm, H) @ (H, ti) -> f32 acc, plus bias, gelu in f32.
    h = jnp.dot(x_ref[...], w1_ref[...], preferred_element_type=jnp.float32)
    h = h + b1_ref[...]
    g = _gelu_tanh(h)

    # fc2 slab: (tm, ti) @ (ti, H) -> accumulate in f32.
    acc_ref[...] += jnp.dot(g.astype(w2_ref.dtype), w2_ref[...],
                            preferred_element_type=jnp.float32)

    @pl.when(k == pl.num_programs(1) - 1)
    def _():
        o_ref[...] = acc_ref[...].astype(o_ref.dtype)


def prepare_siglip_mlp_weights(w1, b1, w2, b2, *, ti=512, compute_dtype=None):
    """One-time weight preparation (run at load time, NOT per forward call).

    w1: (H, I)  fc1.weight pre-transposed;  b1: (I,)
    w2: (I, H)  fc2.weight pre-transposed;  b2: (H,)

    Pads I to a multiple of the I-slab size, casts w1/w2 to compute_dtype
    (keep biases f32), and re-lays w1 out as (n_slabs, H, ti) so each slab is
    one contiguous DMA.
    """
    H, I = w1.shape
    assert w2.shape == (I, H), "w2 must be fc2.weight transposed to (I, H)"
    ti = _round_up(max(int(ti), 128), 128)
    if I <= ti:
        ti_eff, I_pad = I, I
    else:
        ti_eff = ti
        I_pad = _round_up(I, ti_eff)

    if compute_dtype is not None:
        w1 = w1.astype(compute_dtype)
        w2 = w2.astype(compute_dtype)
    b1 = b1.astype(jnp.float32)
    b2 = b2.astype(jnp.float32)

    if I_pad != I:
        # Zero padding is exact: gelu_tanh(0) == 0 and padded W2 rows are 0.
        w1 = jnp.pad(w1, ((0, 0), (0, I_pad - I)))
        b1 = jnp.pad(b1, (0, I_pad - I))
        w2 = jnp.pad(w2, ((0, I_pad - I), (0, 0)))

    n_slabs = I_pad // ti_eff
    # (H, I_pad) -> (n_slabs, H, ti_eff): each fc1 I-slab is contiguous in HBM.
    w1_slabs = jnp.transpose(w1.reshape(H, n_slabs, ti_eff), (1, 0, 2))

    return dict(
        w1=w1_slabs,                 # (n_slabs, H, ti_eff)
        b1=b1.reshape(1, I_pad),     # (1, I_pad) f32
        w2=w2,                       # (I_pad, H)
        b2=b2.reshape(1, H),         # (1, H) f32
        H=H, I=I, I_pad=I_pad, ti=ti_eff, n_slabs=n_slabs,
    )


def _choose_tm(M, tm, row_align):
    """Pick the M tile: big (default 1024), but split into >=2 tiles when one
    tile would swallow all of M and M is large enough to share across v7x's
    two TensorCores."""
    M_al = _round_up(M, row_align)
    if M_al <= tm and M_al > 512:
        half = _round_up(_cdiv(M_al, 2), 256)
        tm_eff = min(tm, half)
    else:
        tm_eff = min(tm, M_al)
    return max(row_align, _round_up(tm_eff, row_align))


def _vmem_bytes_estimate(tm, ti, H, cd_bytes, out_bytes):
    b = 0
    b += 2 * tm * H * cd_bytes     # x tile (double-buffered)
    b += 2 * H * ti * cd_bytes     # w1 slab
    b += 2 * ti * 4                # b1 slab (f32)
    b += 2 * ti * H * cd_bytes     # w2 slab
    b += 2 * H * 4                 # b2 (f32)
    b += 2 * tm * H * out_bytes    # out tile
    b += tm * H * 4                # f32 accumulator scratch
    b += 2 * tm * ti * 4           # gelu temporaries in f32
    return b


def siglip_mlp_prepared(x, params, *, tm=1024, vmem_limit_bytes=None):
    """SiglipMLP forward using weights prepared by prepare_siglip_mlp_weights."""
    orig_shape = x.shape
    out_dtype = x.dtype
    H = params["H"]
    assert orig_shape[-1] == H

    w1, b1, w2, b2 = params["w1"], params["b1"], params["w2"], params["b2"]
    ti_eff, n_slabs = params["ti"], params["n_slabs"]
    cd = w1.dtype
    cd_bytes = jnp.dtype(cd).itemsize
    out_bytes = jnp.dtype(out_dtype).itemsize

    x2 = x.reshape(-1, H)
    if x2.dtype != cd:
        x2 = x2.astype(cd)
    M = x2.shape[0]

    # Row alignment follows sub-32-bit sublane packing: f32->8, bf16->16, 8b->32.
    row_align = max(8, 32 // cd_bytes)
    tm_eff = _choose_tm(M, tm, row_align)
    M_pad = _round_up(M, tm_eff)
    if M_pad != M:
        x2 = jnp.pad(x2, ((0, M_pad - M), (0, 0)))

    if vmem_limit_bytes is None:
        est = _vmem_bytes_estimate(tm_eff, ti_eff, H, cd_bytes, out_bytes)
        vmem_limit_bytes = int(min(max(int(est * 1.3), 32 * 1024 * 1024),
                                   96 * 1024 * 1024))

    grid = (M_pad // tm_eff, n_slabs)

    out = pl.pallas_call(
        siglip_mlp_kernel,
        out_shape=jax.ShapeDtypeStruct((M_pad, H), out_dtype),
        grid_spec=pltpu.PrefetchScalarGridSpec(
            num_scalar_prefetch=0,
            grid=grid,
            in_specs=[
                pl.BlockSpec((tm_eff, H), lambda i, k: (i, 0)),         # x tile
                pl.BlockSpec((None, H, ti_eff), lambda i, k: (k, 0, 0)),  # w1 slab (contiguous)
                pl.BlockSpec((1, ti_eff), lambda i, k: (0, k)),          # b1 slab
                pl.BlockSpec((ti_eff, H), lambda i, k: (k, 0)),          # w2 slab
                pl.BlockSpec((1, H), lambda i, k: (0, 0)),               # b2
            ],
            out_specs=pl.BlockSpec((tm_eff, H), lambda i, k: (i, 0)),
            scratch_shapes=[pltpu.VMEM((tm_eff, H), jnp.float32)],
        ),
        compiler_params=pltpu.CompilerParams(
            # M axis parallel (megacore / v7x 2-TC sharding); I axis is the
            # reduction and must stay "arbitrary" (resident accumulator).
            dimension_semantics=("parallel", "arbitrary"),
            vmem_limit_bytes=vmem_limit_bytes,
        ),
    )(x2, w1, b1, w2, b2)

    return out[:M].reshape(orig_shape)


def siglip_mlp(x, w1, b1, w2, b2, *, tm=1024, ti=512, compute_dtype=None,
               vmem_limit_bytes=None):
    """Convenience wrapper: prepares weights then runs the kernel.

    For repeated calls, hoist prepare_siglip_mlp_weights() out of the hot path.
    compute_dtype defaults to the input dtype (bf16 for real SigLIP); matmul
    accumulation stays f32 regardless.
    """
    if compute_dtype is None:
        compute_dtype = x.dtype
    params = prepare_siglip_mlp_weights(w1, b1, w2, b2, ti=ti,
                                        compute_dtype=compute_dtype)
    return siglip_mlp_prepared(x, params, tm=tm,
                               vmem_limit_bytes=vmem_limit_bytes)


def siglip_mlp_ref(x, w1, b1, w2, b2):
    h = jnp.dot(x, w1) + b1
    h = _gelu_tanh(h)
    return jnp.dot(h, w2) + b2


if __name__ == "__main__":
    # Small config consistent with the module's __init__:
    batch, seq = 2, 8
    hidden_size = 32
    intermediate_size = 64

    key = jax.random.PRNGKey(0)
    kx, kw1, kb1, kw2, kb2 = jax.random.split(key, 5)

    x = jax.random.normal(kx, (batch, seq, hidden_size), dtype=jnp.float32)

    # fc1: nn.Linear(hidden_size, intermediate_size) -> stored transposed (H, I)
    w1 = jax.random.normal(kw1, (hidden_size, intermediate_size), jnp.float32) * 0.05
    b1 = jax.random.normal(kb1, (intermediate_size,), jnp.float32) * 0.05
    # fc2: nn.Linear(intermediate_size, hidden_size) -> stored transposed (I, H)
    w2 = jax.random.normal(kw2, (intermediate_size, hidden_size), jnp.float32) * 0.05
    b2 = jax.random.normal(kb2, (hidden_size,), jnp.float32) * 0.05

    # Hoisted, one-time weight preparation (per the perf review), then forward.
    params = prepare_siglip_mlp_weights(w1, b1, w2, b2, ti=512,
                                        compute_dtype=jnp.float32)
    y = siglip_mlp_prepared(x, params)
    jax.block_until_ready(y)

    y_ref = siglip_mlp_ref(x, w1, b1, w2, b2)
    assert y.shape == x.shape
    assert jnp.allclose(y, y_ref, atol=1e-5, rtol=1e-5), "mismatch vs reference"

    print("KERNEL_OK")
</pallas_src>

<mosaic_0001>
module attributes {stable_mosaic.version = 11 : i64} {
  func.func @siglip_mlp_kernel(%arg0: i32, %arg1: i32, %arg2: memref<16x32xf32, #tpu.memory_space<vmem>>, %arg3: memref<1x32x64xf32, #tpu.memory_space<vmem>>, %arg4: memref<1x64xf32, #tpu.memory_space<vmem>>, %arg5: memref<64x32xf32, #tpu.memory_space<vmem>>, %arg6: memref<1x32xf32, #tpu.memory_space<vmem>>, %arg7: memref<16x32xf32, #tpu.memory_space<vmem>>, %arg8: memref<16x32xf32, #tpu.memory_space<vmem>>) attributes {dimension_semantics = [#tpu.dimension_semantics<parallel>, #tpu.dimension_semantics<arbitrary>], iteration_bounds = array<i64: 1, 1>, scalar_prefetch = 0 : i64, scratch_operands = 1 : i64, tpu.core_type = #tpu.core_type<tc>, window_params = [{transform_indices = @transform_0, window_bounds = array<i64: 16, 32>}, {transform_indices = @transform_1, window_bounds = array<i64: 1, 32, 64>}, {transform_indices = @transform_2, window_bounds = array<i64: 1, 64>}, {transform_indices = @transform_3, window_bounds = array<i64: 64, 32>}, {pipeline_mode = #tpu.pipeline_mode<synchronous>, transform_indices = @transform_4, window_bounds = array<i64: 1, 32>}, {transform_indices = @transform_5, window_bounds = array<i64: 16, 32>}]} {
    %c0_i32 = arith.constant 0 : i32
    %0 = arith.cmpi eq, %arg1, %c0_i32 : i32
    %1 = arith.extui %0 : i1 to i32
    %c0_i32_0 = arith.constant 0 : i32
    %2 = arith.cmpi ne, %1, %c0_i32_0 : i32
    scf.if %2 {
      %c0_20 = arith.constant 0 : index
      %c0_21 = arith.constant 0 : index
      %31 = vector.load %arg6[%c0_20, %c0_21] : memref<1x32xf32, #tpu.memory_space<vmem>>, vector<1x32xf32>
      %32 = vector.shape_cast %31 : vector<1x32xf32> to vector<1x32xf32>
      %33 = vector.broadcast %32 : vector<1x32xf32> to vector<16x32xf32>
      %c0_22 = arith.constant 0 : index
      %c0_23 = arith.constant 0 : index
      %34 = vector.load %arg8[%c0_22, %c0_23] : memref<16x32xf32, #tpu.memory_space<vmem>>, vector<16x32xf32>
      tpu.vector_store %arg8[%c0_22, %c0_23], %33 {strides = array<i32>} : memref<16x32xf32, #tpu.memory_space<vmem>>, vector<16x32xf32>,
    } else {
    }
    %c0 = arith.constant 0 : index
    %c0_1 = arith.constant 0 : index
    %3 = vector.load %arg2[%c0, %c0_1] : memref<16x32xf32, #tpu.memory_space<vmem>>, vector<16x32xf32>
    %c0_2 = arith.constant 0 : index
    %c0_3 = arith.constant 0 : index
    %c0_4 = arith.constant 0 : index
    %4 = vector.load %arg3[%c0_2, %c0_3, %c0_4] : memref<1x32x64xf32, #tpu.memory_space<vmem>>, vector<1x32x64xf32>
    %5 = vector.shape_cast %4 : vector<1x32x64xf32> to vector<32x64xf32>
    %cst = arith.constant dense<0.000000e+00> : vector<16x64xf32>
    %6 = tpu.matmul %3, %5, %cst {dimension_numbers = #tpu.dot_dimension_numbers<[1], [0], [0], [1], [0, 0, 1, 1], [], []>} : vector<16x32xf32>, vector<32x64xf32>, vector<16x64xf32> -> vector<16x64xf32>
    %c0_5 = arith.constant 0 : index
    %c0_6 = arith.constant 0 : index
    %7 = vector.load %arg4[%c0_5, %c0_6] : memref<1x64xf32, #tpu.memory_space<vmem>>, vector<1x64xf32>
    %8 = vector.broadcast %7 : vector<1x64xf32> to vector<16x64xf32>
    %9 = arith.addf %6, %8 : vector<16x64xf32>
    %cst_7 = arith.constant 5.000000e-01 : f32
    %10 = vector.broadcast %cst_7 : f32 to vector<16x64xf32>
    %11 = arith.mulf %10, %9 : vector<16x64xf32>
    %cst_8 = arith.constant 4.471500e-02 : f32
    %12 = vector.broadcast %cst_8 : f32 to vector<16x64xf32>
    %13 = arith.mulf %12, %9 : vector<16x64xf32>
    %14 = arith.mulf %13, %9 : vector<16x64xf32>
    %15 = arith.mulf %14, %9 : vector<16x64xf32>
    %16 = arith.addf %9, %15 : vector<16x64xf32>
    %cst_9 = arith.constant 0.797884583 : f32
    %17 = vector.broadcast %cst_9 : f32 to vector<16x64xf32>
    %18 = arith.mulf %17, %16 : vector<16x64xf32>
    %19 = math.tanh %18 : vector<16x64xf32>
    %cst_10 = arith.constant 1.000000e+00 : f32
    %20 = vector.broadcast %cst_10 : f32 to vector<16x64xf32>
    %21 = arith.addf %20, %19 : vector<16x64xf32>
    %22 = arith.mulf %11, %21 : vector<16x64xf32>
    %c0_11 = arith.constant 0 : index
    %c0_12 = arith.constant 0 : index
    %23 = vector.load %arg8[%c0_11, %c0_12] : memref<16x32xf32, #tpu.memory_space<vmem>>, vector<16x32xf32>
    %c0_13 = arith.constant 0 : index
    %c0_14 = arith.constant 0 : index
    %24 = vector.load %arg5[%c0_13, %c0_14] : memref<64x32xf32, #tpu.memory_space<vmem>>, vector<64x32xf32>
    %cst_15 = arith.constant dense<0.000000e+00> : vector<16x32xf32>
    %25 = tpu.matmul %22, %24, %cst_15 {dimension_numbers = #tpu.dot_dimension_numbers<[1], [0], [0], [1], [0, 0, 1, 1], [], []>} : vector<16x64xf32>, vector<64x32xf32>, vector<16x32xf32> -> vector<16x32xf32>
    %26 = arith.addf %23, %25 : vector<16x32xf32>
    %c0_16 = arith.constant 0 : index
    %c0_17 = arith.constant 0 : index
    %27 = vector.load %arg8[%c0_16, %c0_17] : memref<16x32xf32, #tpu.memory_space<vmem>>, vector<16x32xf32>
    tpu.vector_store %arg8[%c0_16, %c0_17], %26 {strides = array<i32>} : memref<16x32xf32, #tpu.memory_space<vmem>>, vector<16x32xf32>,
    %c0_i32_18 = arith.constant 0 : i32
    %28 = arith.cmpi eq, %arg1, %c0_i32_18 : i32
    %29 = arith.extui %28 : i1 to i32
    %c0_i32_19 = arith.constant 0 : i32
    %30 = arith.cmpi ne, %29, %c0_i32_19 : i32
    scf.if %30 {
      %c0_20 = arith.constant 0 : index
      %c0_21 = arith.constant 0 : index
      %31 = vector.load %arg8[%c0_20, %c0_21] : memref<16x32xf32, #tpu.memory_space<vmem>>, vector<16x32xf32>
      %c0_22 = arith.constant 0 : index
      %c0_23 = arith.constant 0 : index
      %32 = vector.load %arg7[%c0_22, %c0_23] : memref<16x32xf32, #tpu.memory_space<vmem>>, vector<16x32xf32>
      tpu.vector_store %arg7[%c0_22, %c0_23], %31 {strides = array<i32>} : memref<16x32xf32, #tpu.memory_space<vmem>>, vector<16x32xf32>,
    } else {
    }
    return
  }
  func.func @transform_0(%arg0: i32, %arg1: i32) -> (i32, i32) {
    %c0_i32 = arith.constant 0 : i32
    %c0_i32_0 = arith.constant 0 : i32
    return %arg0, %c0_i32 : i32, i32
  }
  func.func @transform_1(%arg0: i32, %arg1: i32) -> (i32, i32, i32) {
    %c0_i32 = arith.constant 0 : i32
    %c0_i32_0 = arith.constant 0 : i32
    %c0_i32_1 = arith.constant 0 : i32
    return %arg1, %c0_i32, %c0_i32_0 : i32, i32, i32
  }
  func.func @transform_2(%arg0: i32, %arg1: i32) -> (i32, i32) {
    %c0_i32 = arith.constant 0 : i32
    %c0_i32_0 = arith.constant 0 : i32
    return %c0_i32, %arg1 : i32, i32
  }
  func.func @transform_3(%arg0: i32, %arg1: i32) -> (i32, i32) {
    %c0_i32 = arith.constant 0 : i32
    %c0_i32_0 = arith.constant 0 : i32
    return %arg1, %c0_i32 : i32, i32
  }
  func.func @transform_4(%arg0: i32, %arg1: i32) -> (i32, i32) {
    %c0_i32 = arith.constant 0 : i32
    %c0_i32_0 = arith.constant 0 : i32
    %c0_i32_1 = arith.constant 0 : i32
    return %c0_i32, %c0_i32_0 : i32, i32
  }
  func.func @transform_5(%arg0: i32, %arg1: i32) -> (i32, i32) {
    %c0_i32 = arith.constant 0 : i32
    %c0_i32_0 = arith.constant 0 : i32
    return %arg0, %c0_i32 : i32, i32
  }
}

</mosaic_0001>

<bundles_post_ra>
// kernel: tpu_custom_call.1
= control target key start
LH: loop header
LB: loop body
LE: loop exit
PB: predicated region body
PF: predicated region fallthrough
CT: control target
= control target key end

     0   :  { %vm32_vm0 = vcmask 261120   ;;  %s475_s0 = inlined_call_operand.vmem [shape: f32[16,32], index: 0, kind: input, shape index: {}]   ;;  %s476_s1 = inlined_call_operand.vmem [shape: f32[1,32,64], index: 1, kind: input, shape index: {}]   ;;  %s477_s2 = inlined_call_operand.vmem [shape: f32[1,64], index: 2, kind: input, shape index: {}]   ;;  %s478_s3 = inlined_call_operand.vmem [shape: f32[64,32], index: 3, kind: input, shape index: {}]   ;;  %s479_s4 = inlined_call_operand.vmem [shape: f32[1,32], index: 4, kind: input, shape index: {}]   ;;  %s480_s5 = inlined_call_operand.hbm [shape: f32[16,32], index: 5, kind: output, shape index: {}]  }
   0x1   :  { %v37_v0 = vld [vmem:[%s476_s1] sm:$0xff]  ;;  %v38_v1 = vld [vmem:[%s476_s1 + $0x8] sm:$0xff]  ;;  %v39_v2 = vld [vmem:[%s476_s1 + $0x10] sm:$0xff] }
   0x2   :  { %v319_v3 = vpack.c.bf16 %v38_v1, %v37_v0  ;;  %v40_v4 = vld [vmem:[%s476_s1 + $0x18] sm:$0xff]  ;;  %v35_v5 = vld [vmem:[%s475_s0] sm:$0xff] }
   0x3   :  { %v323_v6 = vpack.c.bf16 %v40_v4, %v39_v2  ;;  %297 = vmatprep.mubr.msk.f32.mxu0 %vm32_vm0, %v35_v5 }
   0x4   :  { %10 = vsyncpa [#allocation4], 0  ;;  %320 = vmatprep.subr.bf16.mxu0 %v319_v3  ;;  %v36_v7 = vld [vmem:[%s475_s0 + $0x8] sm:$0xff]  ;;  %v150_v8 = vld [vmem:[%s478_s3] sm:$0xff]  ;;  %vm158_vm1 = vcmask 523264  }
   0x5   :  { %322 = vmatpush3.bf16.msra.mxu0 %v319_v3  ;;  %v151_v9 = vld [vmem:[%s478_s3 + $0x8] sm:$0xff]  ;;  %v152_v10 = vld [vmem:[%s478_s3 + $0x10] sm:$0xff]  ;;  %v153_v12 = vld [vmem:[%s478_s3 + $0x18] sm:$0xff] }
   0x6   :  { %324 = vmatprep.subr.bf16.mxu0 %v323_v6  ;;  %v327_v11 = vpack.c.bf16 %v151_v9, %v150_v8  ;;  %v331_v13 = vpack.c.bf16 %v153_v12, %v152_v10  ;;  %v154_v14 = vld [vmem:[%s478_s3 + $0x20] sm:$0xff]  ;;  %v155_v15 = vld [vmem:[%s478_s3 + $0x28] sm:$0xff]  ;;  %v156_v17 = vld [vmem:[%s478_s3 + $0x30] sm:$0xff] }
   0x7   :  { %v335_v16 = vpack.c.bf16 %v155_v15, %v154_v14  ;;  %v157_v18 = vld [vmem:[%s478_s3 + $0x38] sm:$0xff]  ;;  %v267_v20 = vld [vmem:[%s479_s4] ss:$0 sm:$0xff] }
   0x8   :  { %328 = vmatprep.subr.bf16.mxu1 %v327_v11  ;;  %v339_v19 = vpack.c.bf16 %v157_v18, %v156_v17  ;;  %34 = vst.msk [vmem:[#allocation2 + $0x8] sm:$0xff] %vm32_vm0, %v267_v20  ;;  %33 = vst.msk [vmem:[#allocation2] sm:$0xff] %vm32_vm0, %v267_v20  ;;  %v268_v21 = vld [vmem:[%s477_s2] ss:$0 sm:$0xff]  ;;  %s374_s2 = smov [#allocation3]  }
   0x9   :  { %326 = vmatpush3.bf16.msra.mxu0 %v323_v6  ;;  %330 = vmatpush3.bf16.msra.mxu1 %v327_v11  ;;  %s256_s3 = sshll.u32 %s374_s2, 4  ;;  %s257_s3 = int_to_ptr.vmem [resolvable:$true] %s256_s3 }
   0xa   :  { %332 = vmatprep.subr.bf16.mxu1 %v331_v13  ;;  %s350_s4 = scalar_lea.vmem %s257_s3, 256  ;;  %p355_p1 = scmp.lt.s32.totalorder %s257_s3, %s257_s3 }
   0xb   :  { %p351_p0 = scmp.ne.s32.totalorder %s257_s3, %s350_s4  ;;  %p356_p2 = scmp.lt.s32.totalorder %s350_s4, %s350_s4 }
   0xc   :  { %298 = vmatmul.mubr.msk.f32.vlgmr.msra.gmra.mrb[0].mxu0 %vm32_vm0, %v36_v7 }
   0xd   :  { %334 = vmatpush3.bf16.msra.mxu1 %v331_v13  ;;  %p357_p3 = por %p356_p2, %p355_p1 }
   0xe   :  { %336 = vmatprep.subr.bf16.mxu1 %v335_v16 }
   0xf   :  { %v149_v44 = vld [vmem:[#allocation2 + $0x8] sm:$0xff]  ;;  %v148_v45 = vld [vmem:[#allocation2] sm:$0xff]  ;;  %p358_p4 = pnand %p357_p3, %p351_p0 }
  0x11   :  { %338 = vmatpush3.bf16.msra.mxu1 %v335_v16 }
  0x12   :  { %340 = vmatprep.subr.bf16.mxu1 %v339_v19 }
  0x15   :  { %342 = vmatpush3.bf16.msra.mxu1 %v339_v19 }
  0xdf   :  { %v299_v22 = vpop.f32.mrb[0].mxu0 }
  0xe0   :  { %v127_v23 = vadd.f32 %v299_v22, %v268_v21  ;;  %v121_v24 = vpop.f32.mrb[1].mxu0 }
  0xe1   :  { %v122_v25 = vadd.f32 %v268_v21, %v121_v24 }
  0xe2   :  { %v133_v26 = vmul.f32 0.044715, %v127_v23  ;;  %v131_v41 = vmul.f32 0.5, %v127_v23 }
  0xe3   :  { %v132_v27 = vmul.f32 0.044715, %v122_v25  ;;  %v130_v39 = vmul.f32 0.5, %v122_v25 }
  0xe4   :  { %v135_v28 = vmul.f32 %v133_v26, %v127_v23 }
  0xe5   :  { %v134_v29 = vmul.f32 %v132_v27, %v122_v25 }
  0xe6   :  { %v137_v30 = vmul.f32 %v135_v28, %v127_v23 }
  0xe7   :  { %v136_v31 = vmul.f32 %v134_v29, %v122_v25 }
  0xe8   :  { %v139_v32 = vadd.f32 %v137_v30, %v127_v23 }
  0xe9   :  { %v138_v33 = vadd.f32 %v136_v31, %v122_v25 }
  0xea   :  { %v141_v34 = vmul.f32 0.7978846, %v139_v32 }
  0xeb   :  { %v140_v35 = vmul.f32 0.7978846, %v138_v33 }
  0xec   :  { %346 = vtanh.f32 %v141_v34 }
  0xed   :  { %348 = vtanh.f32 %v140_v35 }
  0xf6   :  { %v347_v36 = vpop.eup %346 }
  0xf7   :  { %v349_v37 = vpop.eup %348  ;;  %v145_v38 = vadd.f32 1.0, %v347_v36 }
  0xf8   :  { %v144_v40 = vadd.f32 1.0, %v349_v37 }
  0xf9   :  { %v147_v43 = vmul.f32 %v145_v38, %v131_v41 }
  0xfa   :  { %v146_v42 = vmul.f32 %v144_v40, %v130_v39 }
  0xfc   :  { %316 = vmatprep.mubr.msk.f32.mxu1 %vm158_vm1, %v146_v42 }
  0xfd   :  { %317 = vmatmul.mubr.msk.f32.vlgmr.msra.gmra.mrb[0].mxu1 %vm158_vm1, %v147_v43 }
 0x1d0   :  { %v318_v46 = vpop.f32.mrb[0].mxu1 }
 0x1d1   :  { %v241_v47 = vadd.f32 %v318_v46, %v149_v44  ;;  %v231_v48 = vpop.f32.mrb[1].mxu1 }
 0x1d2   :  { %v240_v49 = vadd.f32 %v231_v48, %v148_v45 }
 0x1d3   :  { %243 = vst.msk [vmem:[#allocation2 + $0x8] sm:$0xff] %vm32_vm0, %v241_v47 }
 0x1d4   :  { %242 = vst.msk [vmem:[#allocation2] sm:$0xff] %vm32_vm0, %v240_v49 }
 0x1da   :  { %v248_v50 = vld [vmem:[#allocation2 + $0x8] sm:$0xff] }
 0x1db   :  { %v247_v51 = vld [vmem:[#allocation2] sm:$0xff]  ;;  %250 = vst.msk [vmem:[#allocation3 + $0x8] sm:$0xff] %vm32_vm0, %v248_v50 }
 0x1dc   :  { %249 = vst.msk [vmem:[#allocation3] sm:$0xff] %vm32_vm0, %v247_v51 }
 0x1dd   :  { %361 = shalt.err (!%p358_p4)
}
 0x1de   :  { %s362_s25 = scalar_lea.hbm %s480_s5, 256 }
 0x1df   :  { %p363_p5 = scmp.ne.s32.totalorder %s480_s5, %s362_s25  ;;  %p366_p6 = scmp.lt.u32.totalorder %s362_s25, %s480_s5 }
 0x1e1   :  { %p368_p7 = pnand %p366_p6, %p363_p5 }
 0x1e3   :  { %371 = shalt.err (!%p368_p7)
}
 0x1e4   :  { %s375_s30 = smov 128   ;;  %s376_s1 = smov 8  }
 0x1e5   :  { %262 = dma.vmem_to_hbm [thread:$0]  %s257_s3, 256, %s480_s5, [#allocation4], %s375_s30, %s375_s30, %s376_s1  }
 0x1e6   :  { %372 = dma.done.wait [#allocation4], 256  }
 0x1e7   :  { %373 = vsyncadd [#allocation4], 4294967040 }
 0x1e8   :  { %266 = vsyncpa [#allocation4], 1 }

</bundles_post_ra>
